<compile_context>
chip_gen: v7x
topology: tpu7x:2x2x1
jax: 0.10.0
libtpu: 0.0.40
codegen_flags: <defaults>
</compile_context>

<pallas_src>
import jax
import jax.numpy as jnp
from jax.experimental import pallas as pl
from jax.experimental.pallas import tpu as pltpu

IN_FEATURES = 3 * 64 * 64   # 12288
OUT_FEATURES = 6


def _linear_kernel(x_ref, w_ref, b_ref, o_ref):
    # x_ref: (tb, K) bf16; w_ref: (N, K) bf16, native lane-dense layout;
    # b_ref: (1, N) f32 resident bias; o_ref: (tb, N) f32.
    # Contract the last axis of both operands: (tb, K) x (N, K) -> (tb, N).
    acc = jax.lax.dot_general(
        x_ref[...],
        w_ref[...],
        dimension_numbers=(((1,), (1,)), ((), ())),
        preferred_element_type=jnp.float32,
    )
    o_ref[...] = (acc + b_ref[...]).astype(o_ref.dtype)


def linear_classifier_forward(x_nchw, weight, bias, *, tb=256, core_parallel=False):
    """x_nchw: (B, 3, 64, 64); weight: (6, 12288); bias: (6,). Returns (B, 6) f32.

    Set core_parallel=True on v7x (2 TensorCores/chip) to shard the batch grid
    axis across both cores; leave False on v5e/v6e (single TC).
    """
    B = x_nchw.shape[0]
    # Same element order as torch .view(-1, 64*64*3); cast the big streams to
    # bf16 (mem-bound kernel), keep f32 accumulation inside the kernel.
    x2d = x_nchw.reshape(B, IN_FEATURES).astype(jnp.bfloat16)
    w_bf16 = weight.astype(jnp.bfloat16)
    bias2d = bias.reshape(1, OUT_FEATURES).astype(jnp.float32)

    tb = min(tb, B)                        # small B -> single grid step
    grid = (pl.cdiv(B, tb),)

    batch_sem = pltpu.CORE_PARALLEL if core_parallel else pltpu.PARALLEL

    bytes_accessed = (
        B * IN_FEATURES * 2            # bf16 x stream
        + OUT_FEATURES * IN_FEATURES * 2  # bf16 resident weight (fetched once)
        + OUT_FEATURES * 4             # bias
        + B * OUT_FEATURES * 4         # f32 output
    )
    cost = pl.CostEstimate(
        flops=2 * B * IN_FEATURES * OUT_FEATURES,
        transcendentals=0,
        bytes_accessed=bytes_accessed,
    )

    return pl.pallas_call(
        _linear_kernel,
        out_shape=jax.ShapeDtypeStruct((B, OUT_FEATURES), jnp.float32),
        grid_spec=pltpu.PrefetchScalarGridSpec(
            num_scalar_prefetch=0,
            grid=grid,
            in_specs=[
                # x: one batch tile per grid step (ragged last tile masked).
                pl.BlockSpec((tb, IN_FEATURES), lambda i: (i, 0)),
                # weight: full array, resident across all grid steps.
                pl.BlockSpec((OUT_FEATURES, IN_FEATURES), lambda i: (0, 0)),
                # bias: tiny resident tile, fetched once.
                pl.BlockSpec((1, OUT_FEATURES), lambda i: (0, 0)),
            ],
            out_specs=pl.BlockSpec((tb, OUT_FEATURES), lambda i: (i, 0)),
        ),
        compiler_params=pltpu.CompilerParams(
            dimension_semantics=(batch_sem,),
        ),
        cost_estimate=cost,
    )(x2d, w_bf16, bias2d)


def init_params(key):
    """Deterministic init mirroring torch.nn.Linear defaults (uniform ±1/sqrt(fan_in))."""
    kw, kb = jax.random.split(key)
    bound = 1.0 / (IN_FEATURES ** 0.5)
    weight = jax.random.uniform(
        kw, (OUT_FEATURES, IN_FEATURES), jnp.float32, minval=-bound, maxval=bound
    )
    bias = jax.random.uniform(
        kb, (OUT_FEATURES,), jnp.float32, minval=-bound, maxval=bound
    )
    return weight, bias


if __name__ == "__main__":
    key = jax.random.PRNGKey(0)
    k_x, k_p = jax.random.split(key)

    B = 2
    x = jax.random.normal(k_x, (B, 3, 64, 64), jnp.float32)
    weight, bias = init_params(k_p)

    y = linear_classifier_forward(x, weight, bias)
    y = jax.block_until_ready(y)

    # Cross-check against plain-JAX f32 reference (relaxed tol for bf16 inputs).
    y_ref = x.reshape(B, IN_FEATURES) @ weight.T + bias
    assert y.shape == (B, OUT_FEATURES)
    assert jnp.allclose(y, y_ref, atol=5e-2, rtol=5e-2), "mismatch vs reference"

    print("KERNEL_OK")
</pallas_src>

<mosaic_0001>
module attributes {stable_mosaic.version = 11 : i64} {
  func.func @_linear_kernel(%arg0: i32, %arg1: memref<2x12288xbf16, #tpu.memory_space<vmem>>, %arg2: memref<6x12288xbf16, #tpu.memory_space<vmem>>, %arg3: memref<1x6xf32, #tpu.memory_space<vmem>>, %arg4: memref<2x6xf32, #tpu.memory_space<vmem>>) attributes {dimension_semantics = [#tpu.dimension_semantics<parallel>], iteration_bounds = array<i64: 1>, scalar_prefetch = 0 : i64, scratch_operands = 0 : i64, tpu.core_type = #tpu.core_type<tc>, window_params = [{transform_indices = @transform_0, window_bounds = array<i64: 2, 12288>}, {pipeline_mode = #tpu.pipeline_mode<synchronous>, transform_indices = @transform_1, window_bounds = array<i64: 6, 12288>}, {pipeline_mode = #tpu.pipeline_mode<synchronous>, transform_indices = @transform_2, window_bounds = array<i64: 1, 6>}, {transform_indices = @transform_3, window_bounds = array<i64: 2, 6>}]} {
    %c0 = arith.constant 0 : index
    %c0_0 = arith.constant 0 : index
    %0 = vector.load %arg1[%c0, %c0_0] : memref<2x12288xbf16, #tpu.memory_space<vmem>>, vector<2x12288xbf16>
    %c0_1 = arith.constant 0 : index
    %c0_2 = arith.constant 0 : index
    %1 = vector.load %arg2[%c0_1, %c0_2] : memref<6x12288xbf16, #tpu.memory_space<vmem>>, vector<6x12288xbf16>
    %cst = arith.constant dense<0.000000e+00> : vector<2x6xf32>
    %2 = tpu.matmul %0, %1, %cst {dimension_numbers = #tpu.dot_dimension_numbers<[1], [1], [0], [0], [0, 0, 1, 0], [], []>} : vector<2x12288xbf16>, vector<6x12288xbf16>, vector<2x6xf32> -> vector<2x6xf32>
    %c0_3 = arith.constant 0 : index
    %c0_4 = arith.constant 0 : index
    %3 = vector.load %arg3[%c0_3, %c0_4] : memref<1x6xf32, #tpu.memory_space<vmem>>, vector<1x6xf32>
    %4 = vector.broadcast %3 : vector<1x6xf32> to vector<2x6xf32>
    %5 = arith.addf %2, %4 : vector<2x6xf32>
    %c0_5 = arith.constant 0 : index
    %c0_6 = arith.constant 0 : index
    %6 = vector.load %arg4[%c0_5, %c0_6] : memref<2x6xf32, #tpu.memory_space<vmem>>, vector<2x6xf32>
    tpu.vector_store %arg4[%c0_5, %c0_6], %5 {strides = array<i32>} : memref<2x6xf32, #tpu.memory_space<vmem>>, vector<2x6xf32>,
    return
  }
  func.func @transform_0(%arg0: i32) -> (i32, i32) {
    %c0_i32 = arith.constant 0 : i32
    %c0_i32_0 = arith.constant 0 : i32
    return %arg0, %c0_i32 : i32, i32
  }
  func.func @transform_1(%arg0: i32) -> (i32, i32) {
    %c0_i32 = arith.constant 0 : i32
    %c0_i32_0 = arith.constant 0 : i32
    %c0_i32_1 = arith.constant 0 : i32
    return %c0_i32, %c0_i32_0 : i32, i32
  }
  func.func @transform_2(%arg0: i32) -> (i32, i32) {
    %c0_i32 = arith.constant 0 : i32
    %c0_i32_0 = arith.constant 0 : i32
    %c0_i32_1 = arith.constant 0 : i32
    return %c0_i32, %c0_i32_0 : i32, i32
  }
  func.func @transform_3(%arg0: i32) -> (i32, i32) {
    %c0_i32 = arith.constant 0 : i32
    %c0_i32_0 = arith.constant 0 : i32
    return %arg0, %c0_i32 : i32, i32
  }
}

</mosaic_0001>

<bundles_post_ra>
// kernel: tpu_custom_call.1
= control target key start
LH: loop header
LB: loop body
LE: loop exit
PB: predicated region body
PF: predicated region fallthrough
CT: control target
= control target key end

     0   :  { %8 = vsyncpa [#allocation3], 0  ;;  %s3681_s0 = inlined_call_operand.hbm [shape: bf16[2,12288], index: 0, kind: input, shape index: {}]   ;;  %s3682_s1 = inlined_call_operand.hbm [shape: bf16[6,12288], index: 1, kind: input, shape index: {}]   ;;  %s3683_s2 = inlined_call_operand.vmem [shape: f32[1,6], index: 2, kind: input, shape index: {}]   ;;  %s3684_s3 = inlined_call_operand.hbm [shape: f32[2,6], index: 3, kind: output, shape index: {}]  }
   0x1   :  { %9 = vsyncpa [#allocation6], 0 }
   0x2   :  { %10 = vsyncpa [#allocation4], 0  ;;  %s3544_s12 = smov [#allocation2]   ;;  %s3545_s14 = smov [#allocation5]  }
   0x3   :  { %s17_s13 = sshll.u32 %s3544_s12, 4  ;;  %s27_s15 = sshll.u32 %s3545_s14, 4  ;;  %s18_s13 = int_to_ptr.vmem [resolvable:$true] %s17_s13  ;;  %s28_s15 = int_to_ptr.vmem [resolvable:$true] %s27_s15 }
   0x4   :  { %s3472_s18 = scalar_lea.hbm %s3681_s0, 1536 }
   0x5   :  { %p3473_p0 = scmp.ne.s32.totalorder %s3681_s0, %s3472_s18  ;;  %p3476_p1 = scmp.lt.u32.totalorder %s3472_s18, %s3681_s0 }
   0x7   :  { %p3478_p2 = pnand %p3476_p1, %p3473_p0 }
   0x9   :  { %3481 = shalt.err (!%p3478_p2)
}
   0xa   :  { %s3482_s23 = scalar_lea.vmem %s18_s13, 1536  ;;  %p3487_p4 = scmp.lt.s32.totalorder %s18_s13, %s18_s13 }
   0xb   :  { %p3483_p3 = scmp.ne.s32.totalorder %s18_s13, %s3482_s23  ;;  %p3488_p5 = scmp.lt.s32.totalorder %s3482_s23, %s3482_s23 }
   0xd   :  { %p3489_p6 = por %p3488_p5, %p3487_p4 }
   0xf   :  { %p3490_p7 = pnand %p3489_p6, %p3483_p3 }
  0x11   :  { %3493 = shalt.err (!%p3490_p7)
}
  0x12   :  { %20 = dma.hbm_to_vmem [thread:$0]  %s3681_s0, 1536, %s18_s13, [#allocation3]  }
  0x13   :  { %s3494_s28 = scalar_lea.hbm %s3682_s1, 6144 }
  0x14   :  { %p3495_p8 = scmp.ne.s32.totalorder %s3682_s1, %s3494_s28  ;;  %p3498_p9 = scmp.lt.u32.totalorder %s3494_s28, %s3682_s1 }
  0x16   :  { %p3500_p10 = pnand %p3498_p9, %p3495_p8 }
  0x18   :  { %3503 = shalt.err (!%p3500_p10)
}
  0x19   :  { %s3504_s6 = scalar_lea.vmem %s28_s15, 6144  ;;  %p3509_p12 = scmp.lt.s32.totalorder %s28_s15, %s28_s15 }
  0x1a   :  { %p3505_p11 = scmp.ne.s32.totalorder %s28_s15, %s3504_s6  ;;  %p3510_p13 = scmp.lt.s32.totalorder %s3504_s6, %s3504_s6 }
  0x1c   :  { %p3511_p0 = por %p3510_p13, %p3509_p12 }
  0x1e   :  { %p3512_p1 = pnand %p3511_p0, %p3505_p11 }
  0x20   :  { %3515 = shalt.err (!%p3512_p1)
}
  0x21   :  { %30 = dma.hbm_to_vmem [thread:$0]  %s3682_s1, 6144, %s28_s15, [#allocation6]  }
  0x22   :  { %3538 = dma.done.wait [#allocation3], 1536  }
  0x23   :  { %3539 = vsyncadd [#allocation3], 4294965760 }
  0x24   :  { %3540 = dma.done.wait [#allocation6], 6144  }
  0x25   :  { %3541 = vsyncadd [#allocation6], 4294961152  ;;  %v123_v0 = vlaneseq  ;;  %v3546_v1 = vmov 1966171168   ;;  %v52_v6 = vld [vmem:[#allocation5] sm:$0x77] }
  0x26   :  { %v121_v2 = vunpack.c.l.s4 %v3546_v1  ;;  %v76_v7 = vld [vmem:[#allocation5 + $0xc0] sm:$0x77]  ;;  %v3079_v9 = vcombine.high %v52_v6, %v52_v6  ;;  %v3078_v11 = vcombine.low %v52_v6, %v52_v6  ;;  %v46_v13 = vld [vmem:[#allocation2 + $0x30] sm:$0xff]  ;;  %v53_v14 = vld [vmem:[#allocation5 + $0x8] sm:$0x77]  ;;  %s3547_s9 = smov [#allocation7]  }
  0x27   :  { %v124_v3 = vshrl.u32 %v123_v0, 7  ;;  %v40_v8 = vld [vmem:[#allocation2] sm:$0xff]  ;;  %v3127_v10 = vcombine.high %v76_v7, %v76_v7  ;;  %v3126_v12 = vcombine.low %v76_v7, %v76_v7  ;;  %v77_v17 = vld [vmem:[#allocation5 + $0xc8] sm:$0x77]  ;;  %v3081_v18 = vcombine.high %v53_v14, %v53_v14  ;;  %v54_v26 = vld [vmem:[#allocation5 + $0x10] sm:$0x77] }
  0x28   :  { %v122_v4 = vunpack.c.0.s8 %v121_v2  ;;  %1139 = vmatprep.subr.bf16.mxu1 %v3079_v9  ;;  %v3129_v21 = vcombine.high %v77_v17, %v77_v17  ;;  %v78_v27 = vld [vmem:[#allocation5 + $0xd0] sm:$0x77]  ;;  %v3080_v28 = vcombine.low %v53_v14, %v53_v14  ;;  %v3128_v29 = vcombine.low %v77_v17, %v77_v17  ;;  %v55_v42 = vld [vmem:[#allocation5 + $0x18] sm:$0x77]  ;;  %v56_v52 = vld [vmem:[#allocation5 + $0x20] sm:$0x77] }
  0x29   :  { %2099 = vmatprep.subr.bf16.mxu0 %v3127_v10  ;;  %1140 = vmatpush1.bf16.xpose.msra.mxu1 %v3078_v11  ;;  %v119_v30 = vcombine.high %v40_v8, %v40_v8  ;;  %v413_v32 = vcombine.high %v46_v13, %v46_v13  ;;  %v3083_v34 = vcombine.high %v54_v26, %v54_v26  ;;  %v79_v43 = vld [vmem:[#allocation5 + $0xd8] sm:$0x77]  ;;  %v80_v53 = vld [vmem:[#allocation5 + $0xe0] sm:$0x77]  ;;  %v41_v60 = vld [vmem:[#allocation2 + $0x8] sm:$0xff]  ;;  %s3067_s10 = sshll.u32 %s3547_s9, 4  ;;  %s3068_s10 = int_to_ptr.vmem [resolvable:$true] %s3067_s10 }
  0x2a   :  { %v3592_v5 = vsub.s32 %v122_v4, %v124_v3  ;;  %2100 = vmatpush1.bf16.xpose.msra.mxu0 %v3126_v12  ;;  %1179 = vmatprep.subr.bf16.mxu1 %v3081_v18  ;;  %v3131_v35 = vcombine.high %v78_v27, %v78_v27  ;;  %v3082_v44 = vcombine.low %v54_v26, %v54_v26  ;;  %v47_v61 = vld [vmem:[#allocation2 + $0x38] sm:$0xff]  ;;  %v57_v4 = vld [vmem:[#allocation5 + $0x28] sm:$0x77]  ;;  %vm3059_vm0 = vcmask 41984   ;;  %s3516_s11 = scalar_lea.vmem %s3068_s10, 32  ;;  %p3521_p3 = scmp.lt.s32.totalorder %s3068_s10, %s3068_s10 }
  0x2b   :  { %2139 = vmatprep.subr.bf16.mxu0 %v3129_v21  ;;  %v3130_v45 = vcombine.low %v78_v27, %v78_v27  ;;  %v3085_v48 = vcombine.high %v55_v42, %v55_v42  ;;  %v3133_v49 = vcombine.high %v79_v43, %v79_v43  ;;  %v3084_v54 = vcombine.low %v55_v42, %v55_v42  ;;  %v81_v6 = vld [vmem:[#allocation5 + $0xe8] sm:$0x77]  ;;  %v84_v42 = vld [vmem:[#allocation5 + $0x100] sm:$0x77]  ;;  %p3517_p2 = scmp.ne.s32.totalorder %s3068_s10, %s3516_s11  ;;  %p3522_p4 = scmp.lt.s32.totalorder %s3516_s11, %s3516_s11 }
  0x2c   :  { %v126_v15 = vrot.slane %v40_v8, %v3592_v5  ;;  %v420_v16 = vrot.slane %v46_v13, %v3592_v5  ;;  %v133_v36 = vrot.slane %v119_v30, %v3592_v5  ;;  %v427_v37 = vrot.slane %v413_v32, %v3592_v5  ;;  %v83_v32 = vld [vmem:[#allocation5 + $0xf8] sm:$0x77] }
  0x2d   :  { %v3132_v55 = vcombine.low %v79_v43, %v79_v43  ;;  %v3087_v58 = vcombine.high %v56_v52, %v56_v52  ;;  %v3135_v59 = vcombine.high %v80_v53, %v80_v53  ;;  %v175_v62 = vrot.slane %v41_v60, %v3592_v5  ;;  %p3523_p5 = por %p3522_p4, %p3521_p3 }
  0x2e   :  { %v134_v19 = vcombine.high %v126_v15, %v126_v15  ;;  %v428_v20 = vcombine.high %v420_v16, %v420_v16  ;;  %v142_v24 = vrot.slane %v126_v15, %v3592_v5  ;;  %v436_v25 = vrot.slane %v420_v16, %v3592_v5  ;;  %v58_v15 = vld [vmem:[#allocation5 + $0x30] sm:$0x77] }
  0x2f   :  { %v135_v38 = vcombine.high %v133_v36, %v133_v36  ;;  %v429_v39 = vcombine.high %v427_v37, %v427_v37  ;;  %v149_v50 = vrot.slane %v133_v36, %v3592_v5  ;;  %v443_v51 = vrot.slane %v427_v37, %v3592_v5  ;;  %v82_v16 = vld [vmem:[#allocation5 + $0xf0] sm:$0x77]  ;;  %p3524_p6 = pnand %p3523_p5, %p3517_p2 }
  0x30   :  { %v156_v22 = vrot.slane %v134_v19, %v3592_v5  ;;  %v450_v23 = vrot.slane %v428_v20, %v3592_v5  ;;  %v164_v40 = vcombine.high %v142_v24, %v142_v24  ;;  %v458_v41 = vcombine.high %v436_v25, %v436_v25 }
  0x31   :  { %v163_v46 = vrot.slane %v135_v38, %v3592_v5  ;;  %v457_v47 = vrot.slane %v429_v39, %v3592_v5  ;;  %v469_v63 = vrot.slane %v47_v61, %v3592_v5  ;;  %v183_v0 = vcombine.high %v175_v62, %v175_v62 }
  0x32   :  { %1171 = vmatprep.mubr.bf16.mxu1 %v156_v22  ;;  %2131 = vmatprep.mubr.bf16.mxu0 %v450_v23  ;;  %v166_v31 = vcombine.high %v156_v22, %v156_v22  ;;  %v460_v33 = vcombine.high %v450_v23, %v450_v23  ;;  %v165_v2 = vcombine.high %v149_v50, %v149_v50 }
  0x33   :  { %1172 = vmatmul.mubr.bf16.vlgmr.msra.gmra.mrb[0].mxu1 %v142_v24  ;;  %2132 = vmatmul.mubr.bf16.vlgmr.msra.gmra.mrb[0].mxu0 %v436_v25  ;;  %v167_v56 = vcombine.high %v163_v46, %v163_v46  ;;  %v461_v57 = vcombine.high %v457_v47, %v457_v47  ;;  %v477_v1 = vcombine.high %v469_v63, %v469_v63 }
  0x34   :  { %1180 = vmatpush1.bf16.xpose.msra.mxu1 %v3080_v28  ;;  %2140 = vmatpush1.bf16.xpose.msra.mxu0 %v3128_v29  ;;  %v459_v3 = vcombine.high %v443_v51, %v443_v51  ;;  %v3086_v7 = vcombine.low %v56_v52, %v56_v52  ;;  %v3134_v8 = vcombine.low %v80_v53, %v80_v53 }
  0x35   :  { %1211 = vmatprep.mubr.bf16.mxu1 %v166_v31  ;;  %2171 = vmatprep.mubr.bf16.mxu0 %v460_v33  ;;  %v205_v9 = vrot.slane %v183_v0, %v3592_v5  ;;  %v499_v10 = vrot.slane %v477_v1, %v3592_v5  ;;  %v3089_v11 = vcombine.high %v57_v4, %v57_v4  ;;  %v59_v31 = vld [vmem:[#allocation5 + $0x38] sm:$0x77] }
  0x36   :  { %1219 = vmatprep.subr.bf16.mxu1 %v3083_v34  ;;  %2179 = vmatprep.subr.bf16.mxu0 %v3131_v35  ;;  %v3137_v12 = vcombine.high %v81_v6, %v81_v6  ;;  %v191_v13 = vrot.slane %v175_v62, %v3592_v5  ;;  %v485_v14 = vrot.slane %v469_v63, %v3592_v5 }
  0x37   :  { %v3088_v17 = vcombine.low %v57_v4, %v57_v4  ;;  %v3136_v18 = vcombine.low %v81_v6, %v81_v6  ;;  %v215_v19 = vcombine.high %v205_v9, %v205_v9  ;;  %v509_v20 = vcombine.high %v499_v10, %v499_v10  ;;  %v86_v4 = vld [vmem:[#allocation5 + $0x110] sm:$0x77] }
  0x38   :  { %v168_v21 = vcombine.high %v41_v60, %v41_v60  ;;  %v462_v22 = vcombine.high %v47_v61, %v47_v61  ;;  %v3091_v23 = vcombine.high %v58_v15, %v58_v15  ;;  %v3139_v24 = vcombine.high %v82_v16, %v82_v16 }
  0x39   :  { %v213_v29 = vcombine.high %v191_v13, %v191_v13  ;;  %v507_v30 = vcombine.high %v485_v14, %v485_v14  ;;  %v3090_v33 = vcombine.low %v58_v15, %v58_v15  ;;  %v3138_v34 = vcombine.low %v82_v16, %v82_v16 }
  0x3a   :  { %v182_v25 = vrot.slane %v168_v21, %v3592_v5  ;;  %v476_v26 = vrot.slane %v462_v22, %v3592_v5  ;;  %v3093_v37 = vcombine.high %v59_v31, %v59_v31  ;;  %v3141_v38 = vcombine.high %v83_v32, %v83_v32  ;;  %v87_v21 = vld [vmem:[#allocation5 + $0x118] sm:$0x77] }
  0x3b   :  { %v3092_v43 = vcombine.low %v59_v31, %v59_v31  ;;  %v3142_v60 = vcombine.low %v84_v42, %v84_v42  ;;  %v88_v31 = vld [vmem:[#allocation5 + $0x120] sm:$0x77] }
  0x3c   :  { %v184_v27 = vcombine.high %v182_v25, %v182_v25  ;;  %v478_v28 = vcombine.high %v476_v26, %v476_v26  ;;  %v198_v39 = vrot.slane %v182_v25, %v3592_v5 }
  0x3e   :  { %v212_v35 = vrot.slane %v184_v27, %v3592_v5  ;;  %v506_v36 = vrot.slane %v478_v28, %v3592_v5  ;;  %v3149_v27 = vcombine.high %v87_v21, %v87_v21 }
  0x3f   :  { %1212 = vmatmul.mubr.bf16.vlgmr.msra.gmra.mrb[0].mxu1 %v164_v40  ;;  %2172 = vmatmul.mubr.bf16.vlgmr.msra.gmra.mrb[0].mxu0 %v458_v41  ;;  %v492_v40 = vrot.slane %v476_v26, %v3592_v5  ;;  %v60_v41 = vld [vmem:[#allocation5 + $0x40] sm:$0x77] }
  0x40   :  { %1220 = vmatpush1.bf16.xpose.msra.mxu1 %v3082_v44  ;;  %2180 = vmatpush1.bf16.xpose.msra.mxu0 %v3130_v45  ;;  %v3140_v44 = vcombine.low %v83_v32, %v83_v32  ;;  %v216_v45 = vcombine.high %v212_v35, %v212_v35 }
  0x41   :  { %1251 = vmatprep.mubr.bf16.mxu1 %v163_v46  ;;  %2211 = vmatprep.mubr.bf16.mxu0 %v457_v47  ;;  %v510_v46 = vcombine.high %v506_v36, %v506_v36  ;;  %v3095_v47 = vcombine.high %v60_v41, %v60_v41 }
  0x42   :  { %1259 = vmatprep.subr.bf16.mxu1 %v3085_v48  ;;  %2219 = vmatprep.subr.bf16.mxu0 %v3133_v49  ;;  %v3143_v48 = vcombine.high %v84_v42, %v84_v42  ;;  %v42_v49 = vld [vmem:[#allocation2 + $0x10] sm:$0xff] }
  0x4b   :  { %1252 = vmatmul.mubr.bf16.vlgmr.msra.gmra.mrb[0].mxu1 %v149_v50  ;;  %2212 = vmatmul.mubr.bf16.vlgmr.msra.gmra.mrb[0].mxu0 %v443_v51  ;;  %v48_v50 = vld [vmem:[#allocation2 + $0x40] sm:$0xff]  ;;  %v224_v51 = vrot.slane %v42_v49, %v3592_v5 }
  0x4c   :  { %1260 = vmatpush1.bf16.xpose.msra.mxu1 %v3084_v54  ;;  %2220 = vmatpush1.bf16.xpose.msra.mxu0 %v3132_v55  ;;  %v518_v52 = vrot.slane %v48_v50, %v3592_v5  ;;  %v214_v55 = vcombine.high %v198_v39, %v198_v39 }
  0x4d   :  { %1291 = vmatprep.mubr.bf16.mxu1 %v167_v56  ;;  %2251 = vmatprep.mubr.bf16.mxu0 %v461_v57  ;;  %v232_v53 = vcombine.high %v224_v51, %v224_v51  ;;  %v508_v56 = vcombine.high %v492_v40, %v492_v40  ;;  %v61_v57 = vld [vmem:[#allocation5 + $0x48] sm:$0x77]  ;;  %v240_v1 = vrot.slane %v224_v51, %v3592_v5 }
  0x4e   :  { %1299 = vmatprep.subr.bf16.mxu1 %v3087_v58  ;;  %2259 = vmatprep.subr.bf16.mxu0 %v3135_v59  ;;  %v526_v54 = vcombine.high %v518_v52, %v518_v52  ;;  %v85_v58 = vld [vmem:[#allocation5 + $0x108] sm:$0x77]  ;;  %v3094_v59 = vcombine.low %v60_v41, %v60_v41  ;;  %v3097_v63 = vcombine.high %v61_v57, %v61_v57 }
  0x4f   :  { %v254_v61 = vrot.slane %v232_v53, %v3592_v5  ;;  %v3145_v0 = vcombine.high %v85_v58, %v85_v58  ;;  %v3096_v6 = vcombine.low %v61_v57, %v61_v57  ;;  %v90_v57 = vld [vmem:[#allocation5 + $0x130] sm:$0x77] }
  0x50   :  { %v548_v62 = vrot.slane %v526_v54, %v3592_v5 }
  0x57   :  { %1292 = vmatmul.mubr.bf16.vlgmr.msra.gmra.mrb[0].mxu1 %v165_v2  ;;  %2252 = vmatmul.mubr.bf16.vlgmr.msra.gmra.mrb[0].mxu0 %v459_v3  ;;  %v534_v2 = vrot.slane %v518_v52, %v3592_v5  ;;  %v62_v3 = vld [vmem:[#allocation5 + $0x50] sm:$0x77] }
  0x58   :  { %1300 = vmatpush1.bf16.xpose.msra.mxu1 %v3086_v7  ;;  %2260 = vmatpush1.bf16.xpose.msra.mxu0 %v3134_v8  ;;  %v3144_v7 = vcombine.low %v85_v58, %v85_v58  ;;  %v264_v8 = vcombine.high %v254_v61, %v254_v61  ;;  %v3098_v22 = vcombine.low %v62_v3, %v62_v3 }
  0x59   :  { %1331 = vmatprep.mubr.bf16.mxu1 %v205_v9  ;;  %2291 = vmatprep.mubr.bf16.mxu0 %v499_v10  ;;  %v558_v9 = vcombine.high %v548_v62, %v548_v62  ;;  %v217_v10 = vcombine.high %v42_v49, %v42_v49  ;;  %v3150_v49 = vcombine.low %v88_v31, %v88_v31 }
  0x5a   :  { %1339 = vmatprep.subr.bf16.mxu1 %v3089_v11  ;;  %2299 = vmatprep.subr.bf16.mxu0 %v3137_v12  ;;  %v511_v11 = vcombine.high %v48_v50, %v48_v50  ;;  %v3099_v12 = vcombine.high %v62_v3, %v62_v3 }
  0x5c   :  { %v525_v15 = vrot.slane %v511_v11, %v3592_v5 }
  0x63   :  { %1332 = vmatmul.mubr.bf16.vlgmr.msra.gmra.mrb[0].mxu1 %v191_v13  ;;  %2292 = vmatmul.mubr.bf16.vlgmr.msra.gmra.mrb[0].mxu0 %v485_v14  ;;  %v3147_v13 = vcombine.high %v86_v4, %v86_v4  ;;  %v231_v14 = vrot.slane %v217_v10, %v3592_v5  ;;  %v91_v10 = vld [vmem:[#allocation5 + $0x138] sm:$0x77] }
  0x64   :  { %1340 = vmatpush1.bf16.xpose.msra.mxu1 %v3088_v17  ;;  %2300 = vmatpush1.bf16.xpose.msra.mxu0 %v3136_v18  ;;  %v527_v17 = vcombine.high %v525_v15, %v525_v15  ;;  %v262_v18 = vcombine.high %v240_v1, %v240_v1 }
  0x65   :  { %1371 = vmatprep.mubr.bf16.mxu1 %v215_v19  ;;  %2331 = vmatprep.mubr.bf16.mxu0 %v509_v20  ;;  %v233_v16 = vcombine.high %v231_v14, %v231_v14  ;;  %v556_v19 = vcombine.high %v534_v2, %v534_v2  ;;  %v63_v20 = vld [vmem:[#allocation5 + $0x58] sm:$0x77]  ;;  %v247_v28 = vrot.slane %v231_v14, %v3592_v5 }
  0x66   :  { %1379 = vmatprep.subr.bf16.mxu1 %v3091_v23  ;;  %2339 = vmatprep.subr.bf16.mxu0 %v3139_v24  ;;  %v3146_v23 = vcombine.low %v86_v4, %v86_v4  ;;  %v555_v25 = vrot.slane %v527_v17, %v3592_v5  ;;  %v3101_v26 = vcombine.high %v63_v20, %v63_v20 }
  0x67   :  { %v261_v24 = vrot.slane %v233_v16, %v3592_v5  ;;  %v3100_v32 = vcombine.low %v63_v20, %v63_v20  ;;  %v3157_v16 = vcombine.high %v91_v10, %v91_v10  ;;  %v92_v20 = vld [vmem:[#allocation5 + $0x140] sm:$0x77] }
  0x6f   :  { %1372 = vmatmul.mubr.bf16.vlgmr.msra.gmra.mrb[0].mxu1 %v213_v29  ;;  %2332 = vmatmul.mubr.bf16.vlgmr.msra.gmra.mrb[0].mxu0 %v507_v30  ;;  %v541_v29 = vrot.slane %v525_v15, %v3592_v5  ;;  %v64_v30 = vld [vmem:[#allocation5 + $0x60] sm:$0x77] }
  0x70   :  { %1380 = vmatpush1.bf16.xpose.msra.mxu1 %v3090_v33  ;;  %2340 = vmatpush1.bf16.xpose.msra.mxu0 %v3138_v34  ;;  %v3148_v33 = vcombine.low %v87_v21, %v87_v21  ;;  %v265_v34 = vcombine.high %v261_v24, %v261_v24 }
  0x71   :  { %1411 = vmatprep.mubr.bf16.mxu1 %v212_v35  ;;  %2371 = vmatprep.mubr.bf16.mxu0 %v506_v36  ;;  %v559_v35 = vcombine.high %v555_v25, %v555_v25  ;;  %v3103_v36 = vcombine.high %v64_v30, %v64_v30 }
  0x72   :  { %1419 = vmatprep.subr.bf16.mxu1 %v3093_v37  ;;  %2379 = vmatprep.subr.bf16.mxu0 %v3141_v38  ;;  %v3151_v37 = vcombine.high %v88_v31, %v88_v31  ;;  %v43_v38 = vld [vmem:[#allocation2 + $0x18] sm:$0xff] }
  0x7b   :  { %1412 = vmatmul.mubr.bf16.vlgmr.msra.gmra.mrb[0].mxu1 %v198_v39  ;;  %2372 = vmatmul.mubr.bf16.vlgmr.msra.gmra.mrb[0].mxu0 %v492_v40  ;;  %v49_v39 = vld [vmem:[#allocation2 + $0x48] sm:$0xff]  ;;  %v273_v40 = vrot.slane %v43_v38, %v3592_v5 }
  0x7c   :  { %1420 = vmatpush1.bf16.xpose.msra.mxu1 %v3092_v43  ;;  %2380 = vmatpush1.bf16.xpose.msra.mxu0 %v3140_v44  ;;  %v567_v41 = vrot.slane %v49_v39, %v3592_v5  ;;  %v263_v44 = vcombine.high %v247_v28, %v247_v28 }
  0x7d   :  { %1451 = vmatprep.mubr.bf16.mxu1 %v216_v45  ;;  %2411 = vmatprep.mubr.bf16.mxu0 %v510_v46  ;;  %v281_v42 = vcombine.high %v273_v40, %v273_v40  ;;  %v557_v45 = vcombine.high %v541_v29, %v541_v29  ;;  %v65_v46 = vld [vmem:[#allocation5 + $0x68] sm:$0x77]  ;;  %v289_v54 = vrot.slane %v273_v40, %v3592_v5 }
  0x7e   :  { %1459 = vmatprep.subr.bf16.mxu1 %v3095_v47  ;;  %2419 = vmatprep.subr.bf16.mxu0 %v3143_v48  ;;  %v575_v43 = vcombine.high %v567_v41, %v567_v41  ;;  %v89_v47 = vld [vmem:[#allocation5 + $0x128] sm:$0x77]  ;;  %v3102_v48 = vcombine.low %v64_v30, %v64_v30  ;;  %v3105_v52 = vcombine.high %v65_v46, %v65_v46 }
  0x7f   :  { %v303_v50 = vrot.slane %v281_v42, %v3592_v5  ;;  %v3153_v53 = vcombine.high %v89_v47, %v89_v47  ;;  %v3104_v58 = vcombine.low %v65_v46, %v65_v46  ;;  %v94_v46 = vld [vmem:[#allocation5 + $0x150] sm:$0x77] }
  0x80   :  { %v597_v51 = vrot.slane %v575_v43, %v3592_v5 }
  0x87   :  { %1452 = vmatmul.mubr.bf16.vlgmr.msra.gmra.mrb[0].mxu1 %v214_v55  ;;  %2412 = vmatmul.mubr.bf16.vlgmr.msra.gmra.mrb[0].mxu0 %v508_v56  ;;  %v583_v55 = vrot.slane %v567_v41, %v3592_v5  ;;  %v66_v56 = vld [vmem:[#allocation5 + $0x70] sm:$0x77] }
  0x88   :  { %1460 = vmatpush1.bf16.xpose.msra.mxu1 %v3094_v59  ;;  %2420 = vmatpush1.bf16.xpose.msra.mxu0 %v3142_v60  ;;  %v3152_v59 = vcombine.low %v89_v47, %v89_v47  ;;  %v313_v60 = vcombine.high %v303_v50, %v303_v50  ;;  %v3106_v11 = vcombine.low %v66_v56, %v66_v56 }
  0x89   :  { %1491 = vmatprep.mubr.bf16.mxu1 %v254_v61  ;;  %2451 = vmatprep.mubr.bf16.mxu0 %v548_v62  ;;  %v607_v61 = vcombine.high %v597_v51, %v597_v51  ;;  %v266_v62 = vcombine.high %v43_v38, %v43_v38  ;;  %v3158_v38 = vcombine.low %v92_v20, %v92_v20 }
  0x8a   :  { %1499 = vmatprep.subr.bf16.mxu1 %v3097_v63  ;;  %2459 = vmatprep.subr.bf16.mxu0 %v3145_v0  ;;  %v560_v63 = vcombine.high %v49_v39, %v49_v39  ;;  %v3107_v0 = vcombine.high %v66_v56, %v66_v56 }
  0x8c   :  { %v574_v3 = vrot.slane %v560_v63, %v3592_v5 }
  0x93   :  { %1492 = vmatmul.mubr.bf16.vlgmr.msra.gmra.mrb[0].mxu1 %v240_v1  ;;  %2452 = vmatmul.mubr.bf16.vlgmr.msra.gmra.mrb[0].mxu0 %v534_v2  ;;  %v3155_v1 = vcombine.high %v90_v57, %v90_v57  ;;  %v280_v2 = vrot.slane %v266_v62, %v3592_v5  ;;  %v95_v62 = vld [vmem:[#allocation5 + $0x158] sm:$0x77] }
  0x94   :  { %1500 = vmatpush1.bf16.xpose.msra.mxu1 %v3096_v6  ;;  %2460 = vmatpush1.bf16.xpose.msra.mxu0 %v3144_v7  ;;  %v576_v6 = vcombine.high %v574_v3, %v574_v3  ;;  %v311_v7 = vcombine.high %v289_v54, %v289_v54 }
  0x95   :  { %1531 = vmatprep.mubr.bf16.mxu1 %v264_v8  ;;  %2491 = vmatprep.mubr.bf16.mxu0 %v558_v9  ;;  %v282_v4 = vcombine.high %v280_v2, %v280_v2  ;;  %v605_v8 = vcombine.high %v583_v55, %v583_v55  ;;  %v67_v9 = vld [vmem:[#allocation5 + $0x78] sm:$0x77]  ;;  %v296_v17 = vrot.slane %v280_v2, %v3592_v5 }
  0x96   :  { %1539 = vmatprep.subr.bf16.mxu1 %v3099_v12  ;;  %2499 = vmatprep.subr.bf16.mxu0 %v3147_v13  ;;  %v3154_v12 = vcombine.low %v90_v57, %v90_v57  ;;  %v604_v14 = vrot.slane %v576_v6, %v3592_v5  ;;  %v3109_v15 = vcombine.high %v67_v9, %v67_v9 }
  0x97   :  { %v310_v13 = vrot.slane %v282_v4, %v3592_v5  ;;  %v3108_v21 = vcombine.low %v67_v9, %v67_v9  ;;  %v3165_v4 = vcombine.high %v95_v62, %v95_v62  ;;  %v96_v9 = vld [vmem:[#allocation5 + $0x160] sm:$0x77] }
  0x9f   :  { %1532 = vmatmul.mubr.bf16.vlgmr.msra.gmra.mrb[0].mxu1 %v262_v18  ;;  %2492 = vmatmul.mubr.bf16.vlgmr.msra.gmra.mrb[0].mxu0 %v556_v19  ;;  %v590_v18 = vrot.slane %v574_v3, %v3592_v5  ;;  %v68_v19 = vld [vmem:[#allocation5 + $0x80] sm:$0x77] }
  0xa0   :  { %1540 = vmatpush1.bf16.xpose.msra.mxu1 %v3098_v22  ;;  %2500 = vmatpush1.bf16.xpose.msra.mxu0 %v3146_v23  ;;  %v3156_v22 = vcombine.low %v91_v10, %v91_v10  ;;  %v314_v23 = vcombine.high %v310_v13, %v310_v13 }
  0xa1   :  { %1571 = vmatprep.mubr.bf16.mxu1 %v261_v24  ;;  %2531 = vmatprep.mubr.bf16.mxu0 %v555_v25  ;;  %v608_v24 = vcombine.high %v604_v14, %v604_v14  ;;  %v3111_v25 = vcombine.high %v68_v19, %v68_v19 }
  0xa2   :  { %1579 = vmatprep.subr.bf16.mxu1 %v3101_v26  ;;  %2539 = vmatprep.subr.bf16.mxu0 %v3149_v27  ;;  %v3159_v26 = vcombine.high %v92_v20, %v92_v20  ;;  %v44_v27 = vld [vmem:[#allocation2 + $0x20] sm:$0xff] }
  0xab   :  { %1572 = vmatmul.mubr.bf16.vlgmr.msra.gmra.mrb[0].mxu1 %v247_v28  ;;  %2532 = vmatmul.mubr.bf16.vlgmr.msra.gmra.mrb[0].mxu0 %v541_v29  ;;  %v50_v28 = vld [vmem:[#allocation2 + $0x50] sm:$0xff]  ;;  %v322_v29 = vrot.slane %v44_v27, %v3592_v5 }
  0xac   :  { %1580 = vmatpush1.bf16.xpose.msra.mxu1 %v3100_v32  ;;  %2540 = vmatpush1.bf16.xpose.msra.mxu0 %v3148_v33  ;;  %v616_v30 = vrot.slane %v50_v28, %v3592_v5  ;;  %v312_v33 = vcombine.high %v296_v17, %v296_v17 }
  0xad   :  { %1611 = vmatprep.mubr.bf16.mxu1 %v265_v34  ;;  %2571 = vmatprep.mubr.bf16.mxu0 %v559_v35  ;;  %v330_v31 = vcombine.high %v322_v29, %v322_v29  ;;  %v606_v34 = vcombine.high %v590_v18, %v590_v18  ;;  %v69_v35 = vld [vmem:[#allocation5 + $0x88] sm:$0x77]  ;;  %v338_v43 = vrot.slane %v322_v29, %v3592_v5 }
  0xae   :  { %1619 = vmatprep.subr.bf16.mxu1 %v3103_v36  ;;  %2579 = vmatprep.subr.bf16.mxu0 %v3151_v37  ;;  %v624_v32 = vcombine.high %v616_v30, %v616_v30  ;;  %v93_v36 = vld [vmem:[#allocation5 + $0x148] sm:$0x77]  ;;  %v3110_v37 = vcombine.low %v68_v19, %v68_v19  ;;  %v3113_v41 = vcombine.high %v69_v35, %v69_v35 }
  0xaf   :  { %v352_v39 = vrot.slane %v330_v31, %v3592_v5  ;;  %v3161_v42 = vcombine.high %v93_v36, %v93_v36  ;;  %v3112_v47 = vcombine.low %v69_v35, %v69_v35  ;;  %v98_v35 = vld [vmem:[#allocation5 + $0x170] sm:$0x77] }
  0xb0   :  { %v646_v40 = vrot.slane %v624_v32, %v3592_v5 }
  0xb7   :  { %1612 = vmatmul.mubr.bf16.vlgmr.msra.gmra.mrb[0].mxu1 %v263_v44  ;;  %2572 = vmatmul.mubr.bf16.vlgmr.msra.gmra.mrb[0].mxu0 %v557_v45  ;;  %v632_v44 = vrot.slane %v616_v30, %v3592_v5  ;;  %v70_v45 = vld [vmem:[#allocation5 + $0x90] sm:$0x77] }
  0xb8   :  { %1620 = vmatpush1.bf16.xpose.msra.mxu1 %v3102_v48  ;;  %2580 = vmatpush1.bf16.xpose.msra.mxu0 %v3150_v49  ;;  %v3160_v48 = vcombine.low %v93_v36, %v93_v36  ;;  %v362_v49 = vcombine.high %v352_v39, %v352_v39  ;;  %v3114_v63 = vcombine.low %v70_v45, %v70_v45 }
  0xb9   :  { %1651 = vmatprep.mubr.bf16.mxu1 %v303_v50  ;;  %2611 = vmatprep.mubr.bf16.mxu0 %v597_v51  ;;  %v656_v50 = vcombine.high %v646_v40, %v646_v40  ;;  %v315_v51 = vcombine.high %v44_v27, %v44_v27  ;;  %v3166_v27 = vcombine.low %v96_v9, %v96_v9 }
  0xba   :  { %1659 = vmatprep.subr.bf16.mxu1 %v3105_v52  ;;  %2619 = vmatprep.subr.bf16.mxu0 %v3153_v53  ;;  %v609_v52 = vcombine.high %v50_v28, %v50_v28  ;;  %v3115_v53 = vcombine.high %v70_v45, %v70_v45 }
  0xbc   :  { %v623_v56 = vrot.slane %v609_v52, %v3592_v5 }
  0xc3   :  { %1652 = vmatmul.mubr.bf16.vlgmr.msra.gmra.mrb[0].mxu1 %v289_v54  ;;  %2612 = vmatmul.mubr.bf16.vlgmr.msra.gmra.mrb[0].mxu0 %v583_v55  ;;  %v3163_v54 = vcombine.high %v94_v46, %v94_v46  ;;  %v329_v55 = vrot.slane %v315_v51, %v3592_v5  ;;  %v99_v51 = vld [vmem:[#allocation5 + $0x178] sm:$0x77] }
  0xc4   :  { %1660 = vmatpush1.bf16.xpose.msra.mxu1 %v3104_v58  ;;  %2620 = vmatpush1.bf16.xpose.msra.mxu0 %v3152_v59  ;;  %v625_v58 = vcombine.high %v623_v56, %v623_v56  ;;  %v360_v59 = vcombine.high %v338_v43, %v338_v43 }
  0xc5   :  { %1691 = vmatprep.mubr.bf16.mxu1 %v313_v60  ;;  %2651 = vmatprep.mubr.bf16.mxu0 %v607_v61  ;;  %v331_v57 = vcombine.high %v329_v55, %v329_v55  ;;  %v654_v60 = vcombine.high %v632_v44, %v632_v44  ;;  %v71_v61 = vld [vmem:[#allocation5 + $0x98] sm:$0x77]  ;;  %v345_v6 = vrot.slane %v329_v55, %v3592_v5 }
  0xc6   :  { %1699 = vmatprep.subr.bf16.mxu1 %v3107_v0  ;;  %2659 = vmatprep.subr.bf16.mxu0 %v3155_v1  ;;  %v3162_v0 = vcombine.low %v94_v46, %v94_v46  ;;  %v653_v2 = vrot.slane %v625_v58, %v3592_v5  ;;  %v3117_v3 = vcombine.high %v71_v61, %v71_v61 }
  0xc7   :  { %v359_v1 = vrot.slane %v331_v57, %v3592_v5  ;;  %v3116_v10 = vcombine.low %v71_v61, %v71_v61  ;;  %v3173_v57 = vcombine.high %v99_v51, %v99_v51  ;;  %v3172_v61 = vcombine.low %v99_v51, %v99_v51 }
  0xcf   :  { %1692 = vmatmul.mubr.bf16.vlgmr.msra.gmra.mrb[0].mxu1 %v311_v7  ;;  %2652 = vmatmul.mubr.bf16.vlgmr.msra.gmra.mrb[0].mxu0 %v605_v8  ;;  %v639_v7 = vrot.slane %v623_v56, %v3592_v5  ;;  %v72_v8 = vld [vmem:[#allocation5 + $0xa0] sm:$0x77] }
  0xd0   :  { %1700 = vmatpush1.bf16.xpose.msra.mxu1 %v3106_v11  ;;  %2660 = vmatpush1.bf16.xpose.msra.mxu0 %v3154_v12  ;;  %v3164_v11 = vcombine.low %v95_v62, %v95_v62  ;;  %v363_v12 = vcombine.high %v359_v1, %v359_v1 }
  0xd1   :  { %1731 = vmatprep.mubr.bf16.mxu1 %v310_v13  ;;  %2691 = vmatprep.mubr.bf16.mxu0 %v604_v14  ;;  %v657_v13 = vcombine.high %v653_v2, %v653_v2  ;;  %v3119_v14 = vcombine.high %v72_v8, %v72_v8 }
  0xd2   :  { %1739 = vmatprep.subr.bf16.mxu1 %v3109_v15  ;;  %2699 = vmatprep.subr.bf16.mxu0 %v3157_v16  ;;  %v3167_v15 = vcombine.high %v96_v9, %v96_v9  ;;  %v45_v16 = vld [vmem:[#allocation2 + $0x28] sm:$0xff] }
  0xdb   :  { %1732 = vmatmul.mubr.bf16.vlgmr.msra.gmra.mrb[0].mxu1 %v296_v17  ;;  %2692 = vmatmul.mubr.bf16.vlgmr.msra.gmra.mrb[0].mxu0 %v590_v18  ;;  %v51_v17 = vld [vmem:[#allocation2 + $0x58] sm:$0xff]  ;;  %v371_v18 = vrot.slane %v45_v16, %v3592_v5 }
  0xdc   :  { %1740 = vmatpush1.bf16.xpose.msra.mxu1 %v3108_v21  ;;  %2700 = vmatpush1.bf16.xpose.msra.mxu0 %v3156_v22  ;;  %v665_v19 = vrot.slane %v51_v17, %v3592_v5  ;;  %v361_v22 = vcombine.high %v345_v6, %v345_v6 }
  0xdd   :  { %1771 = vmatprep.mubr.bf16.mxu1 %v314_v23  ;;  %2731 = vmatprep.mubr.bf16.mxu0 %v608_v24  ;;  %v379_v20 = vcombine.high %v371_v18, %v371_v18  ;;  %v655_v23 = vcombine.high %v639_v7, %v639_v7  ;;  %v73_v24 = vld [vmem:[#allocation5 + $0xa8] sm:$0x77]  ;;  %v387_v32 = vrot.slane %v371_v18, %v3592_v5 }
  0xde   :  { %1779 = vmatprep.subr.bf16.mxu1 %v3111_v25  ;;  %2739 = vmatprep.subr.bf16.mxu0 %v3159_v26  ;;  %v673_v21 = vcombine.high %v665_v19, %v665_v19  ;;  %v97_v25 = vld [vmem:[#allocation5 + $0x168] sm:$0x77]  ;;  %v3118_v26 = vcombine.low %v72_v8, %v72_v8  ;;  %v3121_v30 = vcombine.high %v73_v24, %v73_v24 }
  0xdf   :  { %v401_v28 = vrot.slane %v379_v20, %v3592_v5  ;;  %v3169_v31 = vcombine.high %v97_v25, %v97_v25  ;;  %v3120_v36 = vcombine.low %v73_v24, %v73_v24 }
  0xe0   :  { %v695_v29 = vrot.slane %v673_v21, %v3592_v5 }
  0xe7   :  { %1772 = vmatmul.mubr.bf16.vlgmr.msra.gmra.mrb[0].mxu1 %v312_v33  ;;  %2732 = vmatmul.mubr.bf16.vlgmr.msra.gmra.mrb[0].mxu0 %v606_v34  ;;  %v681_v33 = vrot.slane %v665_v19, %v3592_v5  ;;  %v74_v34 = vld [vmem:[#allocation5 + $0xb0] sm:$0x77] }
  0xe8   :  { %1780 = vmatpush1.bf16.xpose.msra.mxu1 %v3110_v37  ;;  %2740 = vmatpush1.bf16.xpose.msra.mxu0 %v3158_v38  ;;  %v3168_v37 = vcombine.low %v97_v25, %v97_v25  ;;  %v411_v38 = vcombine.high %v401_v28, %v401_v28  ;;  %v3122_v52 = vcombine.low %v74_v34, %v74_v34 }
  0xe9   :  { %1811 = vmatprep.mubr.bf16.mxu1 %v352_v39  ;;  %2771 = vmatprep.mubr.bf16.mxu0 %v646_v40  ;;  %v705_v39 = vcombine.high %v695_v29, %v695_v29  ;;  %v364_v40 = vcombine.high %v45_v16, %v45_v16 }
  0xea   :  { %1819 = vmatprep.subr.bf16.mxu1 %v3113_v41  ;;  %2779 = vmatprep.subr.bf16.mxu0 %v3161_v42  ;;  %v658_v41 = vcombine.high %v51_v17, %v51_v17  ;;  %v3123_v42 = vcombine.high %v74_v34, %v74_v34 }
  0xec   :  { %v672_v45 = vrot.slane %v658_v41, %v3592_v5 }
  0xf3   :  { %1812 = vmatmul.mubr.bf16.vlgmr.msra.gmra.mrb[0].mxu1 %v338_v43  ;;  %2772 = vmatmul.mubr.bf16.vlgmr.msra.gmra.mrb[0].mxu0 %v632_v44  ;;  %v3171_v43 = vcombine.high %v98_v35, %v98_v35  ;;  %v378_v44 = vrot.slane %v364_v40, %v3592_v5 }
  0xf4   :  { %1820 = vmatpush1.bf16.xpose.msra.mxu1 %v3112_v47  ;;  %2780 = vmatpush1.bf16.xpose.msra.mxu0 %v3160_v48  ;;  %v674_v47 = vcombine.high %v672_v45, %v672_v45  ;;  %v409_v48 = vcombine.high %v387_v32, %v387_v32 }
  0xf5   :  { %1851 = vmatprep.mubr.bf16.mxu1 %v362_v49  ;;  %2811 = vmatprep.mubr.bf16.mxu0 %v656_v50  ;;  %v380_v46 = vcombine.high %v378_v44, %v378_v44  ;;  %v703_v49 = vcombine.high %v681_v33, %v681_v33  ;;  %v75_v50 = vld [vmem:[#allocation5 + $0xb8] sm:$0x77]  ;;  %v394_v58 = vrot.slane %v378_v44, %v3592_v5 }
  0xf6   :  { %1859 = vmatprep.subr.bf16.mxu1 %v3115_v53  ;;  %2819 = vmatprep.subr.bf16.mxu0 %v3163_v54  ;;  %v3170_v53 = vcombine.low %v98_v35, %v98_v35  ;;  %v702_v55 = vrot.slane %v674_v47, %v3592_v5  ;;  %v3125_v56 = vcombine.high %v75_v50, %v75_v50 }
  0xf7   :  { %v408_v54 = vrot.slane %v380_v46, %v3592_v5 }
  0xf9   :  { %v412_v62 = vcombine.high %v408_v54, %v408_v54 }
  0xff   :  { %1852 = vmatmul.mubr.bf16.vlgmr.msra.gmra.mrb[0].mxu1 %v360_v59  ;;  %2812 = vmatmul.mubr.bf16.vlgmr.msra.gmra.mrb[0].mxu0 %v654_v60  ;;  %v688_v59 = vrot.slane %v672_v45, %v3592_v5  ;;  %v3124_v60 = vcombine.low %v75_v50, %v75_v50 }
 0x100   :  { %1860 = vmatpush1.bf16.xpose.msra.mxu1 %v3114_v63  ;;  %2820 = vmatpush1.bf16.xpose.msra.mxu0 %v3162_v0  ;;  %v706_v63 = vcombine.high %v702_v55, %v702_v55  ;;  %v410_v0 = vcombine.high %v394_v58, %v394_v58 }
 0x101   :  { %1891 = vmatprep.mubr.bf16.mxu1 %v359_v1  ;;  %2851 = vmatprep.mubr.bf16.mxu0 %v653_v2  ;;  %v704_v1 = vcombine.high %v688_v59, %v688_v59  ;;  %v3077_v2 = vld [vmem:[%s3683_s2] ss:$0 sm:$0xff] }
 0x102   :  { %1899 = vmatprep.subr.bf16.mxu1 %v3117_v3  ;;  %2859 = vmatprep.subr.bf16.mxu0 %v3165_v4 }
 0x10b   :  { %1892 = vmatmul.mubr.bf16.vlgmr.msra.gmra.mrb[0].mxu1 %v345_v6  ;;  %2852 = vmatmul.mubr.bf16.vlgmr.msra.gmra.mrb[0].mxu0 %v639_v7 }
 0x10c   :  { %1900 = vmatpush1.bf16.xpose.msra.mxu1 %v3116_v10  ;;  %2860 = vmatpush1.bf16.xpose.msra.mxu0 %v3164_v11 }
 0x10d   :  { %1931 = vmatprep.mubr.bf16.mxu1 %v363_v12  ;;  %2891 = vmatprep.mubr.bf16.mxu0 %v657_v13 }
 0x10e   :  { %1939 = vmatprep.subr.bf16.mxu1 %v3119_v14  ;;  %2899 = vmatprep.subr.bf16.mxu0 %v3167_v15 }
 0x117   :  { %1932 = vmatmul.mubr.bf16.vlgmr.msra.gmra.mrb[0].mxu1 %v361_v22  ;;  %2892 = vmatmul.mubr.bf16.vlgmr.msra.gmra.mrb[0].mxu0 %v655_v23 }
 0x118   :  { %1940 = vmatpush1.bf16.xpose.msra.mxu1 %v3118_v26  ;;  %2900 = vmatpush1.bf16.xpose.msra.mxu0 %v3166_v27 }
 0x119   :  { %1971 = vmatprep.mubr.bf16.mxu1 %v401_v28  ;;  %2931 = vmatprep.mubr.bf16.mxu0 %v695_v29 }
 0x11a   :  { %1979 = vmatprep.subr.bf16.mxu1 %v3121_v30  ;;  %2939 = vmatprep.subr.bf16.mxu0 %v3169_v31 }
 0x123   :  { %1972 = vmatmul.mubr.bf16.vlgmr.msra.gmra.mrb[0].mxu1 %v387_v32  ;;  %2932 = vmatmul.mubr.bf16.vlgmr.msra.gmra.mrb[0].mxu0 %v681_v33 }
 0x124   :  { %1980 = vmatpush1.bf16.xpose.msra.mxu1 %v3120_v36  ;;  %2940 = vmatpush1.bf16.xpose.msra.mxu0 %v3168_v37 }
 0x125   :  { %2011 = vmatprep.mubr.bf16.mxu1 %v411_v38  ;;  %2971 = vmatprep.mubr.bf16.mxu0 %v705_v39 }
 0x126   :  { %2019 = vmatprep.subr.bf16.mxu1 %v3123_v42  ;;  %2979 = vmatprep.subr.bf16.mxu0 %v3171_v43 }
 0x12f   :  { %2012 = vmatmul.mubr.bf16.vlgmr.msra.gmra.mrb[0].mxu1 %v409_v48  ;;  %2972 = vmatmul.mubr.bf16.vlgmr.msra.gmra.mrb[0].mxu0 %v703_v49 }
 0x130   :  { %2020 = vmatpush1.bf16.xpose.msra.mxu1 %v3122_v52  ;;  %2980 = vmatpush1.bf16.xpose.msra.mxu0 %v3170_v53 }
 0x131   :  { %2051 = vmatprep.mubr.bf16.mxu1 %v408_v54  ;;  %3011 = vmatprep.mubr.bf16.mxu0 %v702_v55 }
 0x132   :  { %2059 = vmatprep.subr.bf16.mxu1 %v3125_v56  ;;  %3019 = vmatprep.subr.bf16.mxu0 %v3173_v57 }
 0x13b   :  { %2052 = vmatmul.mubr.bf16.vlgmr.msra.gmra.mrb[0].mxu1 %v394_v58  ;;  %3012 = vmatmul.mubr.bf16.vlgmr.msra.gmra.mrb[0].mxu0 %v688_v59 }
 0x13c   :  { %2060 = vmatpush1.bf16.xpose.msra.mxu1 %v3124_v60  ;;  %3020 = vmatpush1.bf16.xpose.msra.mxu0 %v3172_v61 }
 0x13d   :  { %2091 = vmatprep.mubr.bf16.mxu1 %v412_v62  ;;  %3051 = vmatprep.mubr.bf16.mxu0 %v706_v63 }
 0x147   :  { %2092 = vmatmul.mubr.bf16.vlgmr.msra.gmra.mrb[0].mxu1 %v410_v0  ;;  %3052 = vmatmul.mubr.bf16.vlgmr.msra.gmra.mrb[0].mxu0 %v704_v1 }
 0x21a   :  { %v2093_v3 = vpop.f32.mrb[0].mxu1  ;;  %v3053_v5 = vpop.f32.mrb[0].mxu0 }
 0x21b   :  { %v3174_v4 = vadd.f32 %v3077_v2, %v2093_v3  ;;  %v2095_v6 = vpop.f32.mrb[1].mxu1  ;;  %v3055_v7 = vpop.f32.mrb[1].mxu0 }
 0x21c   :  { %v2096_v8 = vpop.f32.mrb[2].mxu1  ;;  %v3056_v9 = vpop.f32.mrb[2].mxu0 }
 0x21d   :  { %v3175_v10 = vadd.f32 %v3174_v4, %v3053_v5  ;;  %v2097_v11 = vpop.f32.mrb[3].mxu1  ;;  %v3057_v12 = vpop.f32.mrb[3].mxu0 }
 0x21f   :  { %3060 = vst.msk [vmem:[#allocation7] sm:$0x3] %vm3059_vm0, %v3175_v10 }
 0x220   :  { %3527 = shalt.err (!%p3524_p6)
}
 0x221   :  { %s3528_s13 = scalar_lea.hbm %s3684_s3, 32 }
 0x222   :  { %p3529_p7 = scmp.ne.s32.totalorder %s3684_s3, %s3528_s13  ;;  %p3532_p8 = scmp.lt.u32.totalorder %s3528_s13, %s3684_s3 }
 0x224   :  { %p3534_p9 = pnand %p3532_p8, %p3529_p7 }
 0x226   :  { %3537 = shalt.err (!%p3534_p9)
}
 0x227   :  { %3070 = dma.vmem_to_hbm [thread:$0]  %s3068_s10, 32, %s3684_s3, [#allocation4]  }
 0x228   :  { %3542 = dma.done.wait [#allocation4], 32  }
 0x229   :  { %3543 = vsyncadd [#allocation4], 4294967264 }
 0x22a   :  { %3074 = vsyncpa [#allocation3], 1 }
 0x22b   :  { %3075 = vsyncpa [#allocation6], 1 }
 0x22c   :  { %3076 = vsyncpa [#allocation4], 1 }

</bundles_post_ra>
